<compile_context>
chip_gen: v7x
topology: tpu7x:2x2x1
jax: 0.10.0
libtpu: 0.0.40
codegen_flags: <defaults>
</compile_context>

<pallas_src>
import functools

import jax
import jax.numpy as jnp
from jax import lax
from jax.experimental import pallas as pl
from jax.experimental.pallas import tpu as pltpu


LANE = 128                         # TPU lane width
SUBLANE = 16                       # safe sublane multiple for bf16/f32 tiles
_VMEM_BUDGET = 20 * 1024 * 1024    # conservative working-set target (bytes)
_VMEM_LIMIT = 48 * 1024 * 1024     # > v5e/v6e scoped defaults, < v7x 64 MiB


def _round_up(x, m):
    return (x + m - 1) // m * m


def _vmem_estimate(tile_n, d, cdp):
    """Rough VMEM working set for the chosen tiling."""
    x_bytes = 2 * tile_n * d * 2          # bf16 input rows, double-buffered
    o_bytes = 2 * tile_n * cdp * 4        # f32 output rows, double-buffered
    w_bytes = (d * cdp + 2 * cdp * cdp) * 2   # bf16 weights, single-buffered
    b_bytes = 3 * cdp * 4                 # f32 biases
    return x_bytes + o_bytes + w_bytes + b_bytes


# ----------------------------------------------------------------------------
# Pallas kernel: out = (relu(relu(x@W1 + B1) @ W2 + B2)) @ W3 + B3
# bf16 MXU operands, f32 accumulation / epilogue.
# ----------------------------------------------------------------------------
def conv1d_head_kernel(x_ref, w1_ref, w2_ref, w3_ref,
                       b1_ref, b2_ref, b3_ref, o_ref):
    # layer 1: (tile_n, d) @ (d, cdp)
    h = jnp.dot(x_ref[...], w1_ref[...], preferred_element_type=jnp.float32)
    h = jnp.maximum(h + b1_ref[...], 0.0)
    # layer 2: (tile_n, cdp) @ (cdp, cdp)
    h = jnp.dot(h.astype(jnp.bfloat16), w2_ref[...],
                preferred_element_type=jnp.float32)
    h = jnp.maximum(h + b2_ref[...], 0.0)
    # layer 3 (no relu)
    h = jnp.dot(h.astype(jnp.bfloat16), w3_ref[...],
                preferred_element_type=jnp.float32)
    o_ref[...] = (h + b3_ref[...]).astype(o_ref.dtype)


# ----------------------------------------------------------------------------
# Turn a PyTorch conv1d weight (Cout, Cin, k) with "same" zero padding into a
# dense matrix (Cin*d -> Cout*d), zero-padded to (rows_pad, cols_pad), so that
#   out_flat[n, co*d + x] = sum_{ci,i} in_flat[n, ci*d + i] * dense[ci*d+i, co*d+x]
# matches nn.Conv1d exactly (zero padding handled by the zero band).
# ----------------------------------------------------------------------------
def conv_weight_to_dense(w, d, p, rows_pad, cols_pad):
    c_out, c_in, k = w.shape
    i = jnp.arange(d)[:, None]          # input spatial position
    x = jnp.arange(d)[None, :]          # output spatial position
    t = i - x + p                       # kernel tap index, (d, d)
    valid = (t >= 0) & (t < k)
    t_c = jnp.clip(t, 0, k - 1)
    taps = w[:, :, t_c]                 # (Cout, Cin, d, d)
    taps = jnp.where(valid[None, None, :, :], taps, 0.0)
    dense = jnp.transpose(taps, (1, 2, 0, 3)).reshape(c_in * d, c_out * d)
    dense = jnp.pad(dense.astype(jnp.float32),
                    ((0, rows_pad - c_in * d), (0, cols_pad - c_out * d)))
    return dense.astype(jnp.bfloat16)


def bias_to_flat(b, d, cols_pad):
    c = b.shape[0]
    flat = jnp.repeat(b.astype(jnp.float32), d)      # bias_flat[c*d + x] = b[c]
    flat = jnp.pad(flat, (0, cols_pad - c * d))
    return flat.reshape(1, -1)


@functools.partial(jax.jit,
                   static_argnames=("kernel_size", "num_classes", "tile_n"))
def conv1d_head_forward(x, w1, b1, w2, b2, w3, b3, *,
                        kernel_size, num_classes, tile_n=512):
    assert kernel_size % 2 == 1, "Conv1D_Head requires an odd kernel_size"
    b, l, d = x.shape
    p = kernel_size - (kernel_size // 2 + 1)
    n = b * l
    cd = num_classes * d
    cdp = _round_up(cd, LANE)           # lane-dense (128-aligned) output width

    # --- size the row tile: as large as VMEM comfortably allows ------------
    tile = min(tile_n, _round_up(n, SUBLANE))
    tile = max(SUBLANE, _round_up(tile, SUBLANE))
    while tile > SUBLANE and _vmem_estimate(tile, d, cdp) > _VMEM_BUDGET:
        tile //= 2
        tile = max(SUBLANE, _round_up(tile, SUBLANE))
    n_pad = _round_up(n, tile)

    # --- prepare operands ----------------------------------------------------
    x2 = x.reshape(n, d).astype(jnp.float32)
    if n_pad != n:
        x2 = jnp.pad(x2, ((0, n_pad - n), (0, 0)))
    x2 = x2.astype(jnp.bfloat16)

    w1_dense = conv_weight_to_dense(w1, d, p, d, cdp)       # (d,   cdp) bf16
    w2_dense = conv_weight_to_dense(w2, d, p, cdp, cdp)     # (cdp, cdp) bf16
    w3_dense = conv_weight_to_dense(w3, d, p, cdp, cdp)     # (cdp, cdp) bf16
    b1_flat = bias_to_flat(b1, d, cdp)                      # (1, cdp) f32
    b2_flat = bias_to_flat(b2, d, cdp)
    b3_flat = bias_to_flat(b3, d, cdp)

    grid = (n_pad // tile,)   # for big n this is >=2, so both v7x TCs get work

    const_spec_w1 = pl.BlockSpec((d, cdp), lambda i: (0, 0),
                                 pipeline_mode=pl.Buffered(1))
    const_spec_w = pl.BlockSpec((cdp, cdp), lambda i: (0, 0),
                                pipeline_mode=pl.Buffered(1))
    const_spec_b = pl.BlockSpec((1, cdp), lambda i: (0, 0),
                                pipeline_mode=pl.Buffered(1))

    out_flat = pl.pallas_call(
        conv1d_head_kernel,
        out_shape=jax.ShapeDtypeStruct((n_pad, cdp), jnp.float32),
        grid_spec=pltpu.PrefetchScalarGridSpec(
            num_scalar_prefetch=0,
            grid=grid,
            in_specs=[
                pl.BlockSpec((tile, d), lambda i: (i, 0)),   # x rows (pipelined)
                const_spec_w1,
                const_spec_w,
                const_spec_w,
                const_spec_b,
                const_spec_b,
                const_spec_b,
            ],
            out_specs=pl.BlockSpec((tile, cdp), lambda i: (i, 0)),
        ),
        compiler_params=pltpu.CompilerParams(
            dimension_semantics=("parallel",),
            vmem_limit_bytes=_VMEM_LIMIT),
    )(x2, w1_dense, w2_dense, w3_dense, b1_flat, b2_flat, b3_flat)

    # strip the row / lane padding; (n, C*d) is contiguous (n, C, d), and the
    # torch raw `.reshape(b, l, d, C)` is the same row-major reinterpretation.
    out_flat = out_flat[:n, :cd]
    return out_flat.reshape(b, l, d, num_classes)


# ----------------------------------------------------------------------------
# Pure-JAX f32 reference (lax conv) to validate the kernel.
# ----------------------------------------------------------------------------
def reference_forward(x, w1, b1, w2, b2, w3, b3, *, kernel_size, num_classes):
    b, l, d = x.shape
    p = kernel_size - (kernel_size // 2 + 1)
    h = x.reshape(b * l, 1, d).astype(jnp.float32)
    dn = ("NCH", "OIH", "NCH")

    def conv(inp, w, bias):
        out = lax.conv_general_dilated(inp, w, window_strides=(1,),
                                       padding=[(p, p)],
                                       dimension_numbers=dn)
        return out + bias[None, :, None]

    h = jnp.maximum(conv(h, w1, b1), 0.0)
    h = jnp.maximum(conv(h, w2, b2), 0.0)
    h = conv(h, w3, b3)                 # (N, C, d)
    return h.reshape(b, l, d, num_classes)


if __name__ == "__main__":
    kernel_size = 3
    num_classes = 4
    b, l, d = 2, 8, 16

    key = jax.random.PRNGKey(0)
    k_x, k_w1, k_b1, k_w2, k_b2, k_w3, k_b3 = jax.random.split(key, 7)

    x = jax.random.normal(k_x, (b, l, d), dtype=jnp.float32)
    w1 = 0.1 * jax.random.normal(k_w1, (num_classes, 1, kernel_size), jnp.float32)
    b1 = 0.1 * jax.random.normal(k_b1, (num_classes,), jnp.float32)
    w2 = 0.1 * jax.random.normal(k_w2, (num_classes, num_classes, kernel_size), jnp.float32)
    b2 = 0.1 * jax.random.normal(k_b2, (num_classes,), jnp.float32)
    w3 = 0.1 * jax.random.normal(k_w3, (num_classes, num_classes, kernel_size), jnp.float32)
    b3 = 0.1 * jax.random.normal(k_b3, (num_classes,), jnp.float32)

    out = conv1d_head_forward(x, w1, b1, w2, b2, w3, b3,
                              kernel_size=kernel_size,
                              num_classes=num_classes)
    out = jax.block_until_ready(out)

    ref = reference_forward(x, w1, b1, w2, b2, w3, b3,
                            kernel_size=kernel_size,
                            num_classes=num_classes)

    assert out.shape == (b, l, d, num_classes), out.shape
    # bf16 MXU operands with f32 accumulation -> loose tolerance vs f32 ref.
    assert jnp.allclose(out, ref, rtol=2e-2, atol=2e-2), \
        float(jnp.max(jnp.abs(out - ref)))

    print("KERNEL_OK")
</pallas_src>

<mosaic_0001>
module attributes {stable_mosaic.version = 11 : i64} {
  func.func @conv1d_head_kernel(%arg0: i32, %arg1: memref<16x16xbf16, #tpu.memory_space<vmem>>, %arg2: memref<16x128xbf16, #tpu.memory_space<vmem>>, %arg3: memref<128x128xbf16, #tpu.memory_space<vmem>>, %arg4: memref<128x128xbf16, #tpu.memory_space<vmem>>, %arg5: memref<1x128xf32, #tpu.memory_space<vmem>>, %arg6: memref<1x128xf32, #tpu.memory_space<vmem>>, %arg7: memref<1x128xf32, #tpu.memory_space<vmem>>, %arg8: memref<16x128xf32, #tpu.memory_space<vmem>>) attributes {dimension_semantics = [#tpu.dimension_semantics<parallel>], iteration_bounds = array<i64: 1>, scalar_prefetch = 0 : i64, scratch_operands = 0 : i64, tpu.core_type = #tpu.core_type<tc>, window_params = [{transform_indices = @transform_0, window_bounds = array<i64: 16, 16>}, {pipeline_mode = #tpu.pipeline_mode<synchronous>, transform_indices = @transform_1, window_bounds = array<i64: 16, 128>}, {pipeline_mode = #tpu.pipeline_mode<synchronous>, transform_indices = @transform_2, window_bounds = array<i64: 128, 128>}, {pipeline_mode = #tpu.pipeline_mode<synchronous>, transform_indices = @transform_3, window_bounds = array<i64: 128, 128>}, {pipeline_mode = #tpu.pipeline_mode<synchronous>, transform_indices = @transform_4, window_bounds = array<i64: 1, 128>}, {pipeline_mode = #tpu.pipeline_mode<synchronous>, transform_indices = @transform_5, window_bounds = array<i64: 1, 128>}, {pipeline_mode = #tpu.pipeline_mode<synchronous>, transform_indices = @transform_6, window_bounds = array<i64: 1, 128>}, {transform_indices = @transform_7, window_bounds = array<i64: 16, 128>}]} {
    %c0 = arith.constant 0 : index
    %c0_0 = arith.constant 0 : index
    %0 = vector.load %arg1[%c0, %c0_0] : memref<16x16xbf16, #tpu.memory_space<vmem>>, vector<16x16xbf16>
    %c0_1 = arith.constant 0 : index
    %c0_2 = arith.constant 0 : index
    %1 = vector.load %arg2[%c0_1, %c0_2] : memref<16x128xbf16, #tpu.memory_space<vmem>>, vector<16x128xbf16>
    %cst = arith.constant dense<0.000000e+00> : vector<16x128xf32>
    %2 = tpu.matmul %0, %1, %cst {dimension_numbers = #tpu.dot_dimension_numbers<[1], [0], [0], [1], [0, 0, 1, 1], [], []>} : vector<16x16xbf16>, vector<16x128xbf16>, vector<16x128xf32> -> vector<16x128xf32>
    %c0_3 = arith.constant 0 : index
    %c0_4 = arith.constant 0 : index
    %3 = vector.load %arg5[%c0_3, %c0_4] : memref<1x128xf32, #tpu.memory_space<vmem>>, vector<1x128xf32>
    %4 = vector.broadcast %3 : vector<1x128xf32> to vector<16x128xf32>
    %5 = arith.addf %2, %4 : vector<16x128xf32>
    %cst_5 = arith.constant 0.000000e+00 : f32
    %6 = vector.broadcast %cst_5 : f32 to vector<16x128xf32>
    %7 = arith.maximumf %5, %6 : vector<16x128xf32>
    %8 = arith.truncf %7 : vector<16x128xf32> to vector<16x128xbf16>
    %c0_6 = arith.constant 0 : index
    %c0_7 = arith.constant 0 : index
    %9 = vector.load %arg3[%c0_6, %c0_7] : memref<128x128xbf16, #tpu.memory_space<vmem>>, vector<128x128xbf16>
    %cst_8 = arith.constant dense<0.000000e+00> : vector<16x128xf32>
    %10 = tpu.matmul %8, %9, %cst_8 {dimension_numbers = #tpu.dot_dimension_numbers<[1], [0], [0], [1], [0, 0, 1, 1], [], []>} : vector<16x128xbf16>, vector<128x128xbf16>, vector<16x128xf32> -> vector<16x128xf32>
    %c0_9 = arith.constant 0 : index
    %c0_10 = arith.constant 0 : index
    %11 = vector.load %arg6[%c0_9, %c0_10] : memref<1x128xf32, #tpu.memory_space<vmem>>, vector<1x128xf32>
    %12 = vector.broadcast %11 : vector<1x128xf32> to vector<16x128xf32>
    %13 = arith.addf %10, %12 : vector<16x128xf32>
    %cst_11 = arith.constant 0.000000e+00 : f32
    %14 = vector.broadcast %cst_11 : f32 to vector<16x128xf32>
    %15 = arith.maximumf %13, %14 : vector<16x128xf32>
    %16 = arith.truncf %15 : vector<16x128xf32> to vector<16x128xbf16>
    %c0_12 = arith.constant 0 : index
    %c0_13 = arith.constant 0 : index
    %17 = vector.load %arg4[%c0_12, %c0_13] : memref<128x128xbf16, #tpu.memory_space<vmem>>, vector<128x128xbf16>
    %cst_14 = arith.constant dense<0.000000e+00> : vector<16x128xf32>
    %18 = tpu.matmul %16, %17, %cst_14 {dimension_numbers = #tpu.dot_dimension_numbers<[1], [0], [0], [1], [0, 0, 1, 1], [], []>} : vector<16x128xbf16>, vector<128x128xbf16>, vector<16x128xf32> -> vector<16x128xf32>
    %c0_15 = arith.constant 0 : index
    %c0_16 = arith.constant 0 : index
    %19 = vector.load %arg7[%c0_15, %c0_16] : memref<1x128xf32, #tpu.memory_space<vmem>>, vector<1x128xf32>
    %20 = vector.broadcast %19 : vector<1x128xf32> to vector<16x128xf32>
    %21 = arith.addf %18, %20 : vector<16x128xf32>
    %c0_17 = arith.constant 0 : index
    %c0_18 = arith.constant 0 : index
    %22 = vector.load %arg8[%c0_17, %c0_18] : memref<16x128xf32, #tpu.memory_space<vmem>>, vector<16x128xf32>
    tpu.vector_store %arg8[%c0_17, %c0_18], %21 {strides = array<i32>} : memref<16x128xf32, #tpu.memory_space<vmem>>, vector<16x128xf32>,
    return
  }
  func.func @transform_0(%arg0: i32) -> (i32, i32) {
    %c0_i32 = arith.constant 0 : i32
    %c0_i32_0 = arith.constant 0 : i32
    return %arg0, %c0_i32 : i32, i32
  }
  func.func @transform_1(%arg0: i32) -> (i32, i32) {
    %c0_i32 = arith.constant 0 : i32
    %c0_i32_0 = arith.constant 0 : i32
    %c0_i32_1 = arith.constant 0 : i32
    return %c0_i32, %c0_i32_0 : i32, i32
  }
  func.func @transform_2(%arg0: i32) -> (i32, i32) {
    %c0_i32 = arith.constant 0 : i32
    %c0_i32_0 = arith.constant 0 : i32
    %c0_i32_1 = arith.constant 0 : i32
    return %c0_i32, %c0_i32_0 : i32, i32
  }
  func.func @transform_3(%arg0: i32) -> (i32, i32) {
    %c0_i32 = arith.constant 0 : i32
    %c0_i32_0 = arith.constant 0 : i32
    %c0_i32_1 = arith.constant 0 : i32
    return %c0_i32, %c0_i32_0 : i32, i32
  }
  func.func @transform_4(%arg0: i32) -> (i32, i32) {
    %c0_i32 = arith.constant 0 : i32
    %c0_i32_0 = arith.constant 0 : i32
    %c0_i32_1 = arith.constant 0 : i32
    return %c0_i32, %c0_i32_0 : i32, i32
  }
  func.func @transform_5(%arg0: i32) -> (i32, i32) {
    %c0_i32 = arith.constant 0 : i32
    %c0_i32_0 = arith.constant 0 : i32
    %c0_i32_1 = arith.constant 0 : i32
    return %c0_i32, %c0_i32_0 : i32, i32
  }
  func.func @transform_6(%arg0: i32) -> (i32, i32) {
    %c0_i32 = arith.constant 0 : i32
    %c0_i32_0 = arith.constant 0 : i32
    %c0_i32_1 = arith.constant 0 : i32
    return %c0_i32, %c0_i32_0 : i32, i32
  }
  func.func @transform_7(%arg0: i32) -> (i32, i32) {
    %c0_i32 = arith.constant 0 : i32
    %c0_i32_0 = arith.constant 0 : i32
    return %arg0, %c0_i32 : i32, i32
  }
}

</mosaic_0001>

<bundles_post_ra>
// kernel: conv1d_head_forward.1
= control target key start
LH: loop header
LB: loop body
LE: loop exit
PB: predicated region body
PF: predicated region fallthrough
CT: control target
= control target key end

     0   :  { %v438_v0 = vmov 0.0   ;;  %vm439_vm0 = vmmov 0   ;;  %vm49_vm1 = vcmask 130048   ;;  %s569_s1 = inlined_call_operand.vmem [shape: bf16[16,128], index: 1, kind: input, shape index: {}]   ;;  %s570_s0 = inlined_call_operand.vmem [shape: bf16[16,16], index: 0, kind: input, shape index: {}]   ;;  %s571_s2 = inlined_call_operand.vmem [shape: bf16[128,128], index: 2, kind: input, shape index: {}]   ;;  %s572_s3 = inlined_call_operand.vmem [shape: bf16[128,128], index: 3, kind: input, shape index: {}]   ;;  %s573_s4 = inlined_call_operand.vmem [shape: f32[1,128], index: 4, kind: input, shape index: {}]   ;;  %s574_s5 = inlined_call_operand.vmem [shape: f32[1,128], index: 5, kind: input, shape index: {}]   ;;  %s575_s6 = inlined_call_operand.vmem [shape: f32[1,128], index: 6, kind: input, shape index: {}]   ;;  %s576_s7 = inlined_call_operand.vmem [shape: f32[16,128], index: 7, kind: output, shape index: {}]  }
   0x1   :  { %372 = vmatprep.subr.bf16.mxu0 %v438_v0  ;;  %v420_v1 = vld [vmem:[%s569_s1] sm:$0xff]   ;;  %374 = vmatprep.mubr.msk.bf16.mxu0 %vm439_vm0, %v438_v0  ;;  %v423_v4 = vld [vmem:[%s571_s2 + $0x8] sm:$0xff]   ;;  %v424_v5 = vld [vmem:[%s571_s2 + $0x10] sm:$0xff]  }
   0x2   :  { %v421_v2 = vld [vmem:[%s570_s0] sm:$0xff]   ;;  %378 = vmatprep.subr.bf16.mxu1 %v438_v0  ;;  %394 = vmatprep.mubr.msk.bf16.mxu1 %vm439_vm0, %v438_v0  ;;  %v425_v6 = vld [vmem:[%s571_s2 + $0x18] sm:$0xff]   ;;  %v427_v8 = vld [vmem:[%s571_s2 + $0x28] sm:$0xff]  }
   0x3   :  { %373 = vmatpush3.bf16.msra.mxu0 %v420_v1  ;;  %v422_v3 = vld [vmem:[%s571_s2] sm:$0xff]   ;;  %v428_v9 = vld [vmem:[%s571_s2 + $0x30] sm:$0xff]   ;;  %v429_v10 = vld [vmem:[%s571_s2 + $0x38] sm:$0xff]  }
   0x4   :  { %398 = vmatprep.subr.bf16.mxu0 %v438_v0  ;;  %379 = vmatpush3.bf16.msra.mxu1 %v422_v3  ;;  %v426_v7 = vld [vmem:[%s571_s2 + $0x20] sm:$0xff]   ;;  %v431_v12 = vld [vmem:[%s572_s3 + $0x8] sm:$0xff]   ;;  %v432_v13 = vld [vmem:[%s572_s3 + $0x10] sm:$0xff]  }
   0x5   :  { %380 = vmatprep.subr.bf16.mxu1 %v438_v0  ;;  %v430_v11 = vld [vmem:[%s572_s3] sm:$0xff]   ;;  %v433_v14 = vld [vmem:[%s572_s3 + $0x18] sm:$0xff]   ;;  %v435_v16 = vld [vmem:[%s572_s3 + $0x28] sm:$0xff]  }
   0x6   :  { %375 = vmatmul.mubr.msk.bf16.vlgmr.msra.gmra.mrb[0].mxu0 %vm49_vm1, %v421_v2  ;;  %v434_v15 = vld [vmem:[%s572_s3 + $0x20] sm:$0xff]   ;;  %v436_v27 = vld [vmem:[%s572_s3 + $0x30] sm:$0xff]   ;;  %v437_v28 = vld [vmem:[%s572_s3 + $0x38] sm:$0xff]  }
   0x7   :  { %414 = vmatprep.mubr.msk.bf16.mxu0 %vm439_vm0, %v438_v0  ;;  %399 = vmatpush3.bf16.msra.mxu0 %v430_v11  ;;  %v330_v17 = vld [vmem:[%s573_s4] ss:$0 sm:$0xff] }
   0x8   :  { %381 = vmatpush3.bf16.msra.mxu1 %v423_v4  ;;  %400 = vmatprep.subr.bf16.mxu0 %v438_v0  ;;  %v334_v29 = vld [vmem:[%s574_s5] ss:$0 sm:$0xff] }
   0x9   :  { %382 = vmatprep.subr.bf16.mxu1 %v438_v0  ;;  %v343_v39 = vld [vmem:[%s575_s6] ss:$0 sm:$0xff] }
   0xb   :  { %401 = vmatpush3.bf16.msra.mxu0 %v431_v12 }
   0xc   :  { %383 = vmatpush3.bf16.msra.mxu1 %v424_v5  ;;  %402 = vmatprep.subr.bf16.mxu0 %v438_v0 }
   0xd   :  { %384 = vmatprep.subr.bf16.mxu1 %v438_v0 }
   0xf   :  { %403 = vmatpush3.bf16.msra.mxu0 %v432_v13 }
  0x10   :  { %385 = vmatpush3.bf16.msra.mxu1 %v425_v6  ;;  %404 = vmatprep.subr.bf16.mxu0 %v438_v0 }
  0x11   :  { %386 = vmatprep.subr.bf16.mxu1 %v438_v0 }
  0x13   :  { %405 = vmatpush3.bf16.msra.mxu0 %v433_v14 }
  0x14   :  { %387 = vmatpush3.bf16.msra.mxu1 %v426_v7  ;;  %406 = vmatprep.subr.bf16.mxu0 %v438_v0 }
  0x15   :  { %388 = vmatprep.subr.bf16.mxu1 %v438_v0 }
  0x17   :  { %407 = vmatpush3.bf16.msra.mxu0 %v434_v15 }
  0x18   :  { %389 = vmatpush3.bf16.msra.mxu1 %v427_v8  ;;  %408 = vmatprep.subr.bf16.mxu0 %v438_v0 }
  0x19   :  { %390 = vmatprep.subr.bf16.mxu1 %v438_v0 }
  0x1b   :  { %409 = vmatpush3.bf16.msra.mxu0 %v435_v16 }
  0x1c   :  { %391 = vmatpush3.bf16.msra.mxu1 %v428_v9  ;;  %410 = vmatprep.subr.bf16.mxu0 %v438_v0 }
  0x1d   :  { %392 = vmatprep.subr.bf16.mxu1 %v438_v0 }
  0x1f   :  { %411 = vmatpush3.bf16.msra.mxu0 %v436_v27 }
  0x20   :  { %393 = vmatpush3.bf16.msra.mxu1 %v429_v10  ;;  %412 = vmatprep.subr.bf16.mxu0 %v438_v0 }
  0x23   :  { %413 = vmatpush3.bf16.msra.mxu0 %v437_v28 }
  0xd9   :  { %v87_v18 = vpop.f32.mrb[0].mxu0 }
  0xda   :  { %v88_v19 = vadd.f32 %v330_v17, %v87_v18  ;;  %v376_v20 = vpop.f32.mrb[1].mxu0 }
  0xdb   :  { %v90_v21 = vpop.f32.mrb[2].mxu0 }
  0xdc   :  { %v91_v22 = vadd.f32 %v330_v17, %v90_v21  ;;  %v377_v23 = vpop.f32.mrb[3].mxu0  ;;  %v94_v24 = vmax.f32 %v88_v19, 0.0 }
  0xde   :  { %v95_v25 = vmax.f32 %v91_v22, 0.0 }
  0xe0   :  { %v96_v26 = vpack.c.bf16 %v95_v25, %v94_v24 }
  0xe2   :  { %395 = vmatmul.mubr.bf16.vlgmr.msra.gmra.mrb[0].mxu1 %v96_v26 }
 0x1b5   :  { %v202_v30 = vpop.f32.mrb[0].mxu1 }
 0x1b6   :  { %v203_v31 = vadd.f32 %v334_v29, %v202_v30  ;;  %v396_v32 = vpop.f32.mrb[1].mxu1 }
 0x1b7   :  { %v205_v33 = vpop.f32.mrb[2].mxu1 }
 0x1b8   :  { %v206_v34 = vadd.f32 %v334_v29, %v205_v33  ;;  %v397_v35 = vpop.f32.mrb[3].mxu1  ;;  %v209_v36 = vmax.f32 %v203_v31, 0.0 }
 0x1ba   :  { %v210_v37 = vmax.f32 %v206_v34, 0.0 }
 0x1bc   :  { %v211_v38 = vpack.c.bf16 %v210_v37, %v209_v36 }
 0x1be   :  { %415 = vmatmul.mubr.bf16.vlgmr.msra.gmra.mrb[4].mxu0 %v211_v38 }
 0x291   :  { %v317_v40 = vpop.f32.mrb[4].mxu0 }
 0x292   :  { %v318_v41 = vadd.f32 %v343_v39, %v317_v40  ;;  %v416_v42 = vpop.f32.mrb[5].mxu0 }
 0x293   :  { %v320_v43 = vpop.f32.mrb[6].mxu0 }
 0x294   :  { %324 = vst [vmem:[%s576_s7] sm:$0xff] %v318_v41  ;;  %v321_v44 = vadd.f32 %v343_v39, %v320_v43  ;;  %v417_v45 = vpop.f32.mrb[7].mxu0 }
 0x296   :  { %325 = vst [vmem:[%s576_s7 + $0x8] sm:$0xff] %v321_v44 }

</bundles_post_ra>
